<compile_context>
chip_gen: v7x
topology: tpu7x:2x2x1
jax: 0.10.0
libtpu: 0.0.40
codegen_flags: <defaults>
</compile_context>

<pallas_src>
import jax
import jax.numpy as jnp
from jax.experimental import pallas as pl
from jax.experimental.pallas import tpu as pltpu

_LANE = 128


def _round_up(n, m):
    return ((n + m - 1) // m) * m


def _round_down(n, m):
    return (n // m) * m


def _tpu_vmem_limit_bytes():
    """Generation-aware VMEM cap: ~75% of physical per-TensorCore VMEM.

    v7x: 64 MiB -> 48 MiB; v5e/v6e: 128 MiB -> 96 MiB. Falls back to the conservative
    v7x figure if the hardware query is unavailable.
    """
    cap = None
    try:
        info = pltpu.get_tpu_info()
        cap = int(getattr(info, "vmem_capacity_bytes", 0)) or None
    except Exception:
        cap = None
    if not cap:
        cap = 64 * 1024 * 1024  # conservative: v7x per-TC VMEM
    return min((cap * 3) // 4, 96 * 1024 * 1024)


def _choose_batch_tile(B, D, itemsize, vmem_limit, block_b):
    """Pick the batch tile TB (multiple of 128 rows)."""
    # In VMEM the (TB, D) x block is lane-padded to 128 lanes and double-buffered;
    # let the two x buffers use at most ~half the VMEM limit (rest: weights, the
    # (TB, H) f32 intermediate, output blocks, compiler scratch).
    padded_row_bytes = _round_up(D, _LANE) * itemsize
    rows_vmem = max(_LANE, (vmem_limit // 2) // (2 * padded_row_bytes))
    tb = min(block_b, rows_vmem, _round_up(B, _LANE))
    tb = max(_LANE, _round_down(tb, _LANE))
    # v7x megacore: prefer >= 2 grid steps so the "parallel" batch axis can be
    # split across both TensorCores (no-op on single-core v5e/v6e).
    if B > 2 * _LANE and pl.cdiv(B, tb) < 2:
        tb = max(_LANE, _round_up(pl.cdiv(B, 2), _LANE))
    return tb


def qnet_kernel(x_ref, w1_ref, b1_ref, w2_ref, b2_ref, o_ref):
    # Layer 1 on the MXU; accumulate in f32 regardless of x/w1 dtype (f32 or bf16).
    h = jnp.dot(x_ref[...], w1_ref[...], preferred_element_type=jnp.float32)   # (TB, H)
    h = jnp.maximum(h + b1_ref[...], 0.0)                                      # bias + ReLU (VPU, f32)
    # Layer 2 as  w2(1,H) . h^T(H,TB) -> (1, TB): the kernel stores a lane-dense row
    # (wide unmasked vst / contiguous output DMA) instead of a 1-lane (TB,1) column,
    # whose ~TB/8 masked stores would rival the per-tile x DMA time.
    out = jax.lax.dot_general(
        w2_ref[...], h,
        dimension_numbers=(((1,), (1,)), ((), ())),
        preferred_element_type=jnp.float32,
    )                                                                          # (1, TB)
    o_ref[...] = (out + b2_ref[0, 0]).astype(o_ref.dtype)                      # b2 scalar from SMEM


def qnetwork_forward(x, w1, b1, w2, b2, *, block_b=16384, min_pallas_batch=2048):
    """QNetwork forward: ReLU(x @ w1 + b1) @ w2.T + b2 -> (B, 1) float32.

    x:  (B, D) float32 or bfloat16 (supply bf16 *upstream* to halve x HBM traffic;
        do not cast here — a wrapper-side cast is a separate HBM pass).
    w1: (D, H); b1: (1, H); w2: (1, H) (PyTorch (out, in) layout); b2: (1, 1).
    """
    B, D = x.shape
    H = w1.shape[1]

    # Small-B fast path: at demo-scale batches a Pallas call is pure launch/step
    # latency; a fused XLA dot is strictly better. (Pass min_pallas_batch=0 to force
    # the kernel.)
    if B < min_pallas_batch:
        h = jnp.maximum(jnp.dot(x, w1, preferred_element_type=jnp.float32) + b1, 0.0)
        return (jnp.dot(h, w2.T) + b2).astype(jnp.float32)

    # MXU operands should share a dtype: if activations arrive in bf16, cast only the
    # tiny weight matrix; bias/ReLU/accumulation stay f32 (safe on v5e's f32-only VPU).
    if w1.dtype != x.dtype:
        w1 = w1.astype(x.dtype)
    b1 = b1.astype(jnp.float32).reshape(1, H)
    w2 = w2.astype(jnp.float32).reshape(1, H)
    b2 = b2.astype(jnp.float32).reshape(1, 1)

    x_item = jnp.dtype(x.dtype).itemsize
    w_item = jnp.dtype(w1.dtype).itemsize
    vmem_limit = _tpu_vmem_limit_bytes()
    TB = _choose_batch_tile(B, D, x_item, vmem_limit, block_b)

    B_pad = _round_up(B, TB)
    if B_pad != B:
        # TODO(synk): for very large, non-TB-multiple batches switch to a partial-last-block
        # grid (pl.cdiv(B, TB) without padding) to avoid this extra HBM pass over x.
        x = jnp.pad(x, ((0, B_pad - B), (0, 0)))
    grid = (B_pad // TB,)

    cost = pl.CostEstimate(
        flops=2 * B_pad * H * (D + 1),
        transcendentals=0,
        bytes_accessed=(B_pad * D * x_item       # x (streamed)
                        + D * H * w_item         # w1 (VMEM-resident)
                        + (2 * H + 1) * 4        # b1, w2, b2
                        + B_pad * 4),            # output
    )

    out = pl.pallas_call(
        qnet_kernel,
        out_shape=jax.ShapeDtypeStruct((1, B_pad), jnp.float32),
        grid=grid,
        in_specs=[
            pl.BlockSpec((TB, D), lambda i: (i, 0)),            # x: streamed per batch tile
            pl.BlockSpec((D, H), lambda i: (0, 0)),             # w1: VMEM-resident
            pl.BlockSpec((1, H), lambda i: (0, 0)),             # b1: VMEM-resident
            pl.BlockSpec((1, H), lambda i: (0, 0)),             # w2: VMEM-resident
            pl.BlockSpec(memory_space=pltpu.MemorySpace.SMEM),  # b2: SMEM scalar
        ],
        out_specs=pl.BlockSpec((1, TB), lambda i: (0, i)),      # lane-dense output row
        compiler_params=pltpu.CompilerParams(
            dimension_semantics=("parallel",),                  # megacore sharding on v7x
            vmem_limit_bytes=vmem_limit,                        # generation-aware (48/96 MiB)
        ),
        cost_estimate=cost,
    )(x, w1, b1, w2, b2)

    # (1, B_pad) lane-dense result back to the module's (B, 1) shape.
    return out.reshape(B_pad, 1)[:B]


def init_params(key, input_dim, hidden=64):
    # Deterministic synthetic init (PyTorch-style uniform bounds), not a checkpoint.
    k1, k2, k3, k4 = jax.random.split(key, 4)
    bound1 = 1.0 / jnp.sqrt(jnp.float32(input_dim))
    bound2 = 1.0 / jnp.sqrt(jnp.float32(hidden))
    w1 = jax.random.uniform(k1, (input_dim, hidden), jnp.float32, -bound1, bound1)
    b1 = jax.random.uniform(k2, (1, hidden), jnp.float32, -bound1, bound1)
    w2 = jax.random.uniform(k3, (1, hidden), jnp.float32, -bound2, bound2)  # (out, in) layout
    b2 = jax.random.uniform(k4, (1, 1), jnp.float32, -bound2, bound2)
    return w1, b1, w2, b2


if __name__ == "__main__":
    key = jax.random.PRNGKey(0)
    input_dim, hidden = 32, 64
    kx, kp = jax.random.split(key)
    w1, b1, w2, b2 = init_params(kp, input_dim, hidden)

    def ref_fwd(xin):
        return jnp.maximum(xin.astype(jnp.float32) @ w1 + b1, 0.0) @ w2.T + b2

    # 1) Tiny demo batch (matches the original module's usage); force the Pallas path.
    x_small = jax.random.normal(kx, (8, input_dim), jnp.float32)
    out_small = jax.block_until_ready(
        qnetwork_forward(x_small, w1, b1, w2, b2, min_pallas_batch=0))
    assert out_small.shape == (8, 1)
    assert jnp.allclose(out_small, ref_fwd(x_small), atol=1e-5, rtol=1e-5)

    # 2) Moderate batch: exercises a >=2-step "parallel" grid (megacore on v7x).
    x_med = jax.random.normal(jax.random.PRNGKey(1), (512, input_dim), jnp.float32)
    out_med = jax.block_until_ready(
        qnetwork_forward(x_med, w1, b1, w2, b2, min_pallas_batch=0))
    assert out_med.shape == (512, 1)
    assert jnp.allclose(out_med, ref_fwd(x_med), atol=1e-5, rtol=1e-5)

    # 3) bf16 activations supplied upstream (halves x HBM traffic); looser tolerance.
    out_bf16 = jax.block_until_ready(
        qnetwork_forward(x_med.astype(jnp.bfloat16), w1, b1, w2, b2, min_pallas_batch=0))
    assert out_bf16.shape == (512, 1)
    assert jnp.allclose(out_bf16, ref_fwd(x_med), atol=1e-1, rtol=1e-1)

    # 4) Small-batch fast path (plain XLA) agrees with the reference too.
    out_fast = jax.block_until_ready(qnetwork_forward(x_small, w1, b1, w2, b2))
    assert jnp.allclose(out_fast, ref_fwd(x_small), atol=1e-5, rtol=1e-5)

    print("KERNEL_OK")
</pallas_src>

<mosaic_0001>
module attributes {stable_mosaic.version = 11 : i64} {
  func.func @qnet_kernel(%arg0: i32, %arg1: memref<128x32xf32, #tpu.memory_space<vmem>>, %arg2: memref<32x64xf32, #tpu.memory_space<vmem>>, %arg3: memref<1x64xf32, #tpu.memory_space<vmem>>, %arg4: memref<1x64xf32, #tpu.memory_space<vmem>>, %arg5: memref<1x1xf32, #tpu.memory_space<smem>>, %arg6: memref<1x128xf32, #tpu.memory_space<vmem>>) attributes {dimension_semantics = [#tpu.dimension_semantics<parallel>], iteration_bounds = array<i64: 1>, scalar_prefetch = 0 : i64, scratch_operands = 0 : i64, tpu.core_type = #tpu.core_type<tc>, window_params = [{transform_indices = @transform_0, window_bounds = array<i64: 128, 32>}, {pipeline_mode = #tpu.pipeline_mode<synchronous>, transform_indices = @transform_1, window_bounds = array<i64: 32, 64>}, {pipeline_mode = #tpu.pipeline_mode<synchronous>, transform_indices = @transform_2, window_bounds = array<i64: 1, 64>}, {pipeline_mode = #tpu.pipeline_mode<synchronous>, transform_indices = @transform_3, window_bounds = array<i64: 1, 64>}, {transform_indices = @transform_4, window_bounds = array<i64: 1, 1>}, {transform_indices = @transform_5, window_bounds = array<i64: 1, 128>}]} {
    %c0 = arith.constant 0 : index
    %c0_0 = arith.constant 0 : index
    %0 = vector.load %arg1[%c0, %c0_0] : memref<128x32xf32, #tpu.memory_space<vmem>>, vector<128x32xf32>
    %c0_1 = arith.constant 0 : index
    %c0_2 = arith.constant 0 : index
    %1 = vector.load %arg2[%c0_1, %c0_2] : memref<32x64xf32, #tpu.memory_space<vmem>>, vector<32x64xf32>
    %cst = arith.constant dense<0.000000e+00> : vector<128x64xf32>
    %2 = tpu.matmul %0, %1, %cst {dimension_numbers = #tpu.dot_dimension_numbers<[1], [0], [0], [1], [0, 0, 1, 1], [], []>} : vector<128x32xf32>, vector<32x64xf32>, vector<128x64xf32> -> vector<128x64xf32>
    %c0_3 = arith.constant 0 : index
    %c0_4 = arith.constant 0 : index
    %3 = vector.load %arg3[%c0_3, %c0_4] : memref<1x64xf32, #tpu.memory_space<vmem>>, vector<1x64xf32>
    %4 = vector.broadcast %3 : vector<1x64xf32> to vector<128x64xf32>
    %5 = arith.addf %2, %4 : vector<128x64xf32>
    %cst_5 = arith.constant 0.000000e+00 : f32
    %6 = vector.broadcast %cst_5 : f32 to vector<128x64xf32>
    %7 = arith.maximumf %5, %6 : vector<128x64xf32>
    %c0_6 = arith.constant 0 : index
    %c0_7 = arith.constant 0 : index
    %8 = vector.load %arg4[%c0_6, %c0_7] : memref<1x64xf32, #tpu.memory_space<vmem>>, vector<1x64xf32>
    %cst_8 = arith.constant dense<0.000000e+00> : vector<1x128xf32>
    %9 = tpu.matmul %8, %7, %cst_8 {dimension_numbers = #tpu.dot_dimension_numbers<[1], [1], [0], [0], [0, 0, 1, 0], [], []>} : vector<1x64xf32>, vector<128x64xf32>, vector<1x128xf32> -> vector<1x128xf32>
    %c0_9 = arith.constant 0 : index
    %c0_10 = arith.constant 0 : index
    %10 = memref.load %arg5[%c0_9, %c0_10] : memref<1x1xf32, #tpu.memory_space<smem>>
    %11 = vector.broadcast %10 : f32 to vector<1x128xf32>
    %12 = arith.addf %9, %11 : vector<1x128xf32>
    %c0_11 = arith.constant 0 : index
    %c0_12 = arith.constant 0 : index
    %13 = vector.load %arg6[%c0_11, %c0_12] : memref<1x128xf32, #tpu.memory_space<vmem>>, vector<1x128xf32>
    tpu.vector_store %arg6[%c0_11, %c0_12], %12 {strides = array<i32>} : memref<1x128xf32, #tpu.memory_space<vmem>>, vector<1x128xf32>,
    return
  }
  func.func @transform_0(%arg0: i32) -> (i32, i32) {
    %c0_i32 = arith.constant 0 : i32
    %c0_i32_0 = arith.constant 0 : i32
    return %arg0, %c0_i32 : i32, i32
  }
  func.func @transform_1(%arg0: i32) -> (i32, i32) {
    %c0_i32 = arith.constant 0 : i32
    %c0_i32_0 = arith.constant 0 : i32
    %c0_i32_1 = arith.constant 0 : i32
    return %c0_i32, %c0_i32_0 : i32, i32
  }
  func.func @transform_2(%arg0: i32) -> (i32, i32) {
    %c0_i32 = arith.constant 0 : i32
    %c0_i32_0 = arith.constant 0 : i32
    %c0_i32_1 = arith.constant 0 : i32
    return %c0_i32, %c0_i32_0 : i32, i32
  }
  func.func @transform_3(%arg0: i32) -> (i32, i32) {
    %c0_i32 = arith.constant 0 : i32
    %c0_i32_0 = arith.constant 0 : i32
    %c0_i32_1 = arith.constant 0 : i32
    return %c0_i32, %c0_i32_0 : i32, i32
  }
  func.func @transform_4(%arg0: i32) -> (i32, i32) {
    %c0_i32 = arith.constant 0 : i32
    %c0_i32_0 = arith.constant 0 : i32
    %c0_i32_1 = arith.constant 0 : i32
    return %c0_i32, %c0_i32_0 : i32, i32
  }
  func.func @transform_5(%arg0: i32) -> (i32, i32) {
    %c0_i32 = arith.constant 0 : i32
    %c0_i32_0 = arith.constant 0 : i32
    return %c0_i32, %arg0 : i32, i32
  }
}

</mosaic_0001>

<bundles_post_ra>
// kernel: tpu_custom_call.1
= control target key start
LH: loop header
LB: loop body
LE: loop exit
PB: predicated region body
PF: predicated region fallthrough
CT: control target
= control target key end

     0   :  { %vm49_vm0 = vcmask 261120   ;;  %s767_s0 = inlined_call_operand.vmem [shape: f32[128,32], index: 0, kind: input, shape index: {}]   ;;  %s768_s1 = inlined_call_operand.vmem [shape: f32[32,64], index: 1, kind: input, shape index: {}]   ;;  %s769_s2 = inlined_call_operand.vmem [shape: f32[1,64], index: 2, kind: input, shape index: {}]   ;;  %s770_s3 = inlined_call_operand.vmem [shape: f32[1,64], index: 3, kind: input, shape index: {}]   ;;  %s771_s4 = inlined_call_operand.<no memory space> [shape: f32[1,1], index: 4, kind: input, shape index: {}]   ;;  %s772_s5 = inlined_call_operand.hbm [shape: f32[1,128], index: 5, kind: output, shape index: {}]  }
   0x1   :  { %v38_v0 = vld [vmem:[%s768_s1] sm:$0xff]  ;;  %v39_v1 = vld [vmem:[%s768_s1 + $0x8] sm:$0xff]  ;;  %v40_v2 = vld [vmem:[%s768_s1 + $0x10] sm:$0xff] }
   0x2   :  { %v537_v3 = vpack.c.bf16 %v39_v1, %v38_v0  ;;  %v41_v4 = vld [vmem:[%s768_s1 + $0x18] sm:$0xff]  ;;  %v22_v5 = vld [vmem:[%s767_s0] sm:$0xff] }
   0x3   :  { %v541_v6 = vpack.c.bf16 %v41_v4, %v40_v2  ;;  %478 = vmatprep.mubr.msk.f32.mxu0 %vm49_vm0, %v22_v5 }
   0x4   :  { %538 = vmatprep.subr.bf16.mxu0 %v537_v3 }
   0x5   :  { %540 = vmatpush3.bf16.msra.mxu0 %v537_v3 }
   0x6   :  { %542 = vmatprep.subr.bf16.mxu0 %v541_v6 }
   0x7   :  { %11 = vsyncpa [#allocation4], 0  ;;  %v23_v7 = vld [vmem:[%s767_s0 + $0x8] sm:$0xff]  ;;  %v24_v8 = vld [vmem:[%s767_s0 + $0x10] sm:$0xff]  ;;  %v605_v22 = vmov 0.0|0.0   ;;  %vm606_vm1 = vmmov 0  }
   0x8   :  { %v25_v9 = vld [vmem:[%s767_s0 + $0x18] sm:$0xff]  ;;  %v26_v10 = vld [vmem:[%s767_s0 + $0x20] sm:$0xff]  ;;  %v27_v11 = vld [vmem:[%s767_s0 + $0x28] sm:$0xff]  ;;  %545 = vmatprep.subr.bf16.mxu1 %v605_v22  ;;  %v607_v23 = vmov 0.0   ;;  %vm262_vm2 = vcmask 523264   ;;  %s608_s10 = smov [#allocation3]  }
   0x9   :  { %544 = vmatpush3.bf16.msra.mxu0 %v541_v6  ;;  %v28_v12 = vld [vmem:[%s767_s0 + $0x30] sm:$0xff]  ;;  %v29_v13 = vld [vmem:[%s767_s0 + $0x38] sm:$0xff]  ;;  %v30_v14 = vld [vmem:[%s767_s0 + $0x40] sm:$0xff]  ;;  %534 = vmatprep.mubr.msk.f32.mxu1 %vm606_vm1, %v607_v23  ;;  %s391_s11 = sshll.u32 %s608_s10, 4  ;;  %s392_s11 = int_to_ptr.vmem [resolvable:$true] %s391_s11 }
   0xa   :  { %v31_v15 = vld [vmem:[%s767_s0 + $0x48] sm:$0xff]  ;;  %v32_v16 = vld [vmem:[%s767_s0 + $0x50] sm:$0xff]  ;;  %v33_v17 = vld [vmem:[%s767_s0 + $0x58] sm:$0xff]  ;;  %s581_s12 = scalar_lea.vmem %s392_s11, 16  ;;  %s585_s13 = scalar_lea.vmem %s392_s11, 32 }
   0xb   :  { %v34_v18 = vld [vmem:[%s767_s0 + $0x60] sm:$0xff]  ;;  %v35_v19 = vld [vmem:[%s767_s0 + $0x68] sm:$0xff]  ;;  %v36_v20 = vld [vmem:[%s767_s0 + $0x70] sm:$0xff]  ;;  %p582_p0 = scmp.ne.s32.totalorder %s392_s11, %s581_s12  ;;  %p586_p1 = scmp.lt.s32.totalorder %s392_s11, %s392_s11 }
   0xc   :  { %479 = vmatmul.mubr.msk.f32.vlgmr.msra.gmra.mrb[0].mxu0 %vm49_vm0, %v23_v7  ;;  %v37_v21 = vld [vmem:[%s767_s0 + $0x78] sm:$0xff]  ;;  %v399_v24 = vld [vmem:[%s769_s2] ss:$0 sm:$0xff]  ;;  %vm721_vm3 = vmpackc.low %vm262_vm2, %vm262_vm2  ;;  %p587_p2 = scmp.lt.s32.totalorder %s585_s13, %s581_s12 }
   0xd   :  { %481 = vmatprep.mubr.msk.f32.mxu0 %vm49_vm0, %v24_v8 }
   0xe   :  { %p588_p3 = por %p587_p2, %p586_p1 }
  0x10   :  { %482 = vmatmul.mubr.msk.f32.gmra.mrb[2].mxu0 %vm49_vm0, %v25_v9  ;;  %p589_p4 = pnand %p588_p3, %p582_p0 }
  0x11   :  { %484 = vmatprep.mubr.msk.f32.mxu0 %vm49_vm0, %v26_v10 }
  0x14   :  { %485 = vmatmul.mubr.msk.f32.gmra.mrb[4].mxu0 %vm49_vm0, %v27_v11 }
  0x15   :  { %487 = vmatprep.mubr.msk.f32.mxu0 %vm49_vm0, %v28_v12 }
  0x18   :  { %488 = vmatmul.mubr.msk.f32.gmra.mrb[6].mxu0 %vm49_vm0, %v29_v13 }
  0x19   :  { %490 = vmatprep.mubr.msk.f32.mxu0 %vm49_vm0, %v30_v14 }
  0x1c   :  { %491 = vmatmul.mubr.msk.f32.gmra.mrb[8].mxu0 %vm49_vm0, %v31_v15 }
  0x1d   :  { %493 = vmatprep.mubr.msk.f32.mxu0 %vm49_vm0, %v32_v16 }
  0x20   :  { %494 = vmatmul.mubr.msk.f32.gmra.mrb[10].mxu0 %vm49_vm0, %v33_v17 }
  0x21   :  { %496 = vmatprep.mubr.msk.f32.mxu0 %vm49_vm0, %v34_v18  ;;  %v259_v18 = vld [vmem:[%s770_s3] sm:$0x1] }
  0x24   :  { %497 = vmatmul.mubr.msk.f32.gmra.mrb[12].mxu0 %vm49_vm0, %v35_v19  ;;  %v261_v19 = vstv %s771_s4 }
  0x25   :  { %499 = vmatprep.mubr.msk.f32.mxu0 %vm49_vm0, %v36_v20 }
  0x28   :  { %500 = vmatmul.mubr.msk.f32.gmra.mrb[14].mxu0 %vm49_vm0, %v37_v21 }
  0xdf   :  { %v480_v25 = vpop.f32.mrb[0].mxu0 }
  0xe0   :  { %v170_v26 = vadd.f32 %v480_v25, %v399_v24  ;;  %v164_v27 = vpop.f32.mrb[1].mxu0 }
  0xe1   :  { %v165_v28 = vadd.f32 %v399_v24, %v164_v27 }
  0xe2   :  { %v244_v29 = vmax.f32 %v170_v26, 0.0 }
  0xe3   :  { %v243_v30 = vmax.f32 %v165_v28, 0.0  ;;  %v483_v31 = vpop.f32.mrb[2].mxu0 }
  0xe4   :  { %v180_v32 = vadd.f32 %v483_v31, %v399_v24  ;;  %v174_v33 = vpop.f32.mrb[3].mxu0 }
  0xe5   :  { %v546_v35 = vpack.c.bf16 %v244_v29, %v243_v30  ;;  %v175_v36 = vadd.f32 %v399_v24, %v174_v33 }
  0xe6   :  { %v246_v37 = vmax.f32 %v180_v32, 0.0 }
  0xe7   :  { %v245_v38 = vmax.f32 %v175_v36, 0.0  ;;  %548 = vmatpush3.bf16.xpose.msk.msra.mxu1 %vm721_vm3, %v546_v35  ;;  %v486_v39 = vpop.f32.mrb[4].mxu0 }
  0xe8   :  { %v190_v40 = vadd.f32 %v486_v39, %v399_v24  ;;  %549 = vmatprep.subr.bf16.mxu1 %v605_v22  ;;  %v184_v41 = vpop.f32.mrb[5].mxu0 }
  0xe9   :  { %v550_v42 = vpack.c.bf16 %v246_v37, %v245_v38  ;;  %v185_v43 = vadd.f32 %v399_v24, %v184_v41 }
  0xea   :  { %v248_v44 = vmax.f32 %v190_v40, 0.0 }
  0xeb   :  { %v247_v45 = vmax.f32 %v185_v43, 0.0  ;;  %v489_v46 = vpop.f32.mrb[6].mxu0 }
  0xec   :  { %v200_v47 = vadd.f32 %v489_v46, %v399_v24  ;;  %v194_v48 = vpop.f32.mrb[7].mxu0 }
  0xed   :  { %v554_v49 = vpack.c.bf16 %v248_v44, %v247_v45  ;;  %v195_v50 = vadd.f32 %v399_v24, %v194_v48 }
  0xee   :  { %v250_v51 = vmax.f32 %v200_v47, 0.0 }
  0xef   :  { %552 = vmatpush3.bf16.xpose.msk.msra.mxu1 %vm721_vm3, %v550_v42  ;;  %v249_v52 = vmax.f32 %v195_v50, 0.0  ;;  %v492_v53 = vpop.f32.mrb[8].mxu0 }
  0xf0   :  { %553 = vmatprep.subr.bf16.mxu1 %v605_v22  ;;  %v210_v54 = vadd.f32 %v492_v53, %v399_v24  ;;  %v204_v55 = vpop.f32.mrb[9].mxu0 }
  0xf1   :  { %v558_v56 = vpack.c.bf16 %v250_v51, %v249_v52  ;;  %v205_v57 = vadd.f32 %v399_v24, %v204_v55 }
  0xf2   :  { %v252_v58 = vmax.f32 %v210_v54, 0.0 }
  0xf3   :  { %v251_v59 = vmax.f32 %v205_v57, 0.0  ;;  %v495_v60 = vpop.f32.mrb[10].mxu0 }
  0xf4   :  { %v220_v61 = vadd.f32 %v495_v60, %v399_v24  ;;  %v214_v62 = vpop.f32.mrb[11].mxu0 }
  0xf5   :  { %v562_v63 = vpack.c.bf16 %v252_v58, %v251_v59  ;;  %v215_v0 = vadd.f32 %v399_v24, %v214_v62 }
  0xf6   :  { %v254_v1 = vmax.f32 %v220_v61, 0.0 }
  0xf7   :  { %556 = vmatpush3.bf16.xpose.msk.msra.mxu1 %vm721_vm3, %v554_v49  ;;  %v253_v2 = vmax.f32 %v215_v0, 0.0  ;;  %v498_v3 = vpop.f32.mrb[12].mxu0 }
  0xf8   :  { %557 = vmatprep.subr.bf16.mxu1 %v605_v22  ;;  %v230_v4 = vadd.f32 %v498_v3, %v399_v24  ;;  %v224_v5 = vpop.f32.mrb[13].mxu0 }
  0xf9   :  { %v566_v6 = vpack.c.bf16 %v254_v1, %v253_v2  ;;  %v225_v7 = vadd.f32 %v399_v24, %v224_v5 }
  0xfa   :  { %v256_v8 = vmax.f32 %v230_v4, 0.0 }
  0xfb   :  { %v255_v9 = vmax.f32 %v225_v7, 0.0  ;;  %v501_v10 = vpop.f32.mrb[14].mxu0 }
  0xfc   :  { %v240_v11 = vadd.f32 %v501_v10, %v399_v24  ;;  %v234_v12 = vpop.f32.mrb[15].mxu0 }
  0xfd   :  { %v570_v13 = vpack.c.bf16 %v256_v8, %v255_v9  ;;  %v235_v14 = vadd.f32 %v399_v24, %v234_v12 }
  0xfe   :  { %v258_v15 = vmax.f32 %v240_v11, 0.0 }
  0xff   :  { %560 = vmatpush3.bf16.xpose.msk.msra.mxu1 %vm721_vm3, %v558_v56  ;;  %v257_v16 = vmax.f32 %v235_v14, 0.0 }
 0x100   :  { %561 = vmatprep.subr.bf16.mxu1 %v605_v22 }
 0x101   :  { %v574_v17 = vpack.c.bf16 %v258_v15, %v257_v16 }
 0x107   :  { %564 = vmatpush3.bf16.xpose.msk.msra.mxu1 %vm721_vm3, %v562_v63 }
 0x108   :  { %565 = vmatprep.subr.bf16.mxu1 %v605_v22 }
 0x10f   :  { %568 = vmatpush3.bf16.xpose.msk.msra.mxu1 %vm721_vm3, %v566_v6 }
 0x110   :  { %569 = vmatprep.subr.bf16.mxu1 %v605_v22 }
 0x117   :  { %572 = vmatpush3.bf16.xpose.msk.msra.mxu1 %vm721_vm3, %v570_v13 }
 0x118   :  { %573 = vmatprep.subr.bf16.mxu1 %v605_v22 }
 0x11f   :  { %576 = vmatpush3.bf16.xpose.msk.msra.mxu1 %vm721_vm3, %v574_v17 }
 0x126   :  { %535 = vmatmul.mubr.msk.f32.vlgmr.msra.gmra.mrb[0].mxu1 %vm262_vm2, %v259_v18 }
 0x1f9   :  { %v380_v20 = vpop.f32.mrb[0].mxu1 }
 0x1fa   :  { %v381_v21 = vadd.f32 %v380_v20, %v261_v19  ;;  %v536_v23 = vpop.f32.mrb[1].mxu1 }
 0x1fc   :  { %384 = vst [vmem:[#allocation3] sm:$0x1] %v381_v21 }
 0x1fd   :  { %592 = shalt.err (!%p589_p4)
}
 0x1fe   :  { %s593_s15 = scalar_lea.hbm %s772_s5, 16 }
 0x1ff   :  { %p594_p5 = scmp.ne.s32.totalorder %s772_s5, %s593_s15  ;;  %p597_p6 = scmp.lt.u32.totalorder %s593_s15, %s772_s5 }
 0x201   :  { %p599_p7 = pnand %p597_p6, %p594_p5 }
 0x203   :  { %602 = shalt.err (!%p599_p7)
}
 0x204   :  { %394 = dma.vmem_to_hbm [thread:$0]  %s392_s11, 16, %s772_s5, [#allocation4]  }
 0x205   :  { %603 = dma.done.wait [#allocation4], 16  }
 0x206   :  { %604 = vsyncadd [#allocation4], 4294967280 }
 0x207   :  { %398 = vsyncpa [#allocation4], 1 }

</bundles_post_ra>
